<compile_context>
chip_gen: v7x
topology: tpu7x:2x2x1
jax: 0.10.0
libtpu: 0.0.40
codegen_flags: <defaults>
</compile_context>

<pallas_src>
import functools

import jax
import jax.numpy as jnp
from jax.experimental import pallas as pl
from jax.experimental.pallas import tpu as pltpu


def _round_up(x, m):
    return ((x + m - 1) // m) * m


def _tpu_generation():
    """Return (tensorcores_per_chip, vmem_budget_bytes) with safe fallbacks."""
    num_tc = 1
    vmem_budget = 100 * 1024 * 1024      # v5e/v6e: 128 MiB physical -> ~100 MiB budget
    try:
        kind = jax.devices()[0].device_kind.lower()
    except Exception:
        kind = ""
    if "v7" in kind or "7x" in kind:
        num_tc = 2                       # v7x: 2 TensorCores / chip
        vmem_budget = 48 * 1024 * 1024   # v7x: 64 MiB physical per TC -> ~48 MiB budget
    return num_tc, vmem_budget


def _choose_block_b(B, latent_dim, hidden_dim, output_dim, num_tc, vmem_budget,
                    max_block=16384):
    """Pick the batch tile.

    - VMEM-budget aware: double-buffered z/out tiles + resident (double-buffered)
      weights + f32 hidden activations must fit under ~70% of the per-core budget.
    - Single-TC chips (v5e/v6e): one tile when the batch fits (sequential grid;
      splitting only adds ~0.35us/step overhead).
    - v7x (2 TCs): split into >= num_tc tiles so the 'parallel' axis shards work.
    """
    bytes_per_row = 4 * (2 * latent_dim + 2 * output_dim + 2 * hidden_dim)
    weight_bytes = 4 * 2 * (latent_dim * hidden_dim + hidden_dim * hidden_dim
                            + hidden_dim * output_dim + 2 * hidden_dim + output_dim)
    avail = max(int(vmem_budget * 0.7) - weight_bytes, 8 * bytes_per_row)
    cap = max(8, (avail // max(bytes_per_row, 1)) // 8 * 8)
    cap = min(cap, max_block)

    if num_tc > 1 and B > 8:
        # Give each TensorCore at least one tile (multiple of 8; edge block clips).
        return min(_round_up(pl.cdiv(B, num_tc), 8), cap)
    if B <= cap:
        return B            # single step; a full-dim batch block is always legal
    return cap              # multiple of 8; last block handled as a clipped edge block


def decoder_kernel(z_ref, w1_ref, b1_ref, w2_ref, b2_ref, w3_ref, b3_ref, out_ref):
    # fc1 + ReLU
    h = jnp.dot(z_ref[...], w1_ref[...], preferred_element_type=jnp.float32)
    h = jnp.maximum(h + b1_ref[...], 0.0)
    # fc2 + ReLU
    h = jnp.dot(h, w2_ref[...], preferred_element_type=jnp.float32)
    h = jnp.maximum(h + b2_ref[...], 0.0)
    # fc_out (no activation); out block is exactly (block_b, output_dim)
    out = jnp.dot(h, w3_ref[...], preferred_element_type=jnp.float32) + b3_ref[...]
    out_ref[...] = out.astype(out_ref.dtype)


@functools.partial(jax.jit, static_argnames=("block_b",))
def decoder_forward(z, params, *, block_b=None):
    """z: [B, latent_dim] float32. params: dict of transposed weights / biases."""
    B, latent_dim = z.shape
    w1, b1 = params["w1"], params["b1"]   # (latent, hidden), (1, hidden)
    w2, b2 = params["w2"], params["b2"]   # (hidden, hidden), (1, hidden)
    w3, b3 = params["w3"], params["b3"]   # (hidden, output), (1, output)
    hidden_dim = w1.shape[1]
    output_dim = w3.shape[1]

    num_tc, vmem_budget = _tpu_generation()
    if block_b is None:
        block_b = _choose_block_b(B, latent_dim, hidden_dim, output_dim,
                                  num_tc, vmem_budget)

    grid = (pl.cdiv(B, block_b),)

    # Batch tiled along the grid; weights/biases replicated (constant block index 0)
    # so Pallas fetches them once and keeps them resident across grid steps.
    in_specs = [
        pl.BlockSpec((block_b, latent_dim), lambda i: (i, 0)),
        pl.BlockSpec((latent_dim, hidden_dim), lambda i: (0, 0)),
        pl.BlockSpec((1, hidden_dim), lambda i: (0, 0)),
        pl.BlockSpec((hidden_dim, hidden_dim), lambda i: (0, 0)),
        pl.BlockSpec((1, hidden_dim), lambda i: (0, 0)),
        pl.BlockSpec((hidden_dim, output_dim), lambda i: (0, 0)),
        pl.BlockSpec((1, output_dim), lambda i: (0, 0)),
    ]
    out_specs = pl.BlockSpec((block_b, output_dim), lambda i: (i, 0))

    return pl.pallas_call(
        decoder_kernel,
        out_shape=jax.ShapeDtypeStruct((B, output_dim), z.dtype),
        grid_spec=pltpu.PrefetchScalarGridSpec(
            num_scalar_prefetch=0,
            grid=grid,
            in_specs=in_specs,
            out_specs=out_specs,
        ),
        compiler_params=pltpu.CompilerParams(
            dimension_semantics=("parallel",),
            vmem_limit_bytes=vmem_budget,
        ),
    )(z, w1, b1, w2, b2, w3, b3)


def init_decoder_params(key, latent_dim, hidden_dim, output_dim):
    """Deterministic synthetic init, same shapes as the PyTorch module
    (weights stored transposed as (in, out) for the kernel)."""
    ks = jax.random.split(key, 6)

    def u(k, shape, fan_in):
        bound = 1.0 / jnp.sqrt(fan_in)
        return jax.random.uniform(k, shape, jnp.float32, -bound, bound)

    return {
        "w1": u(ks[0], (latent_dim, hidden_dim), latent_dim),
        "b1": u(ks[1], (1, hidden_dim), latent_dim),
        "w2": u(ks[2], (hidden_dim, hidden_dim), hidden_dim),
        "b2": u(ks[3], (1, hidden_dim), hidden_dim),
        "w3": u(ks[4], (hidden_dim, output_dim), hidden_dim),
        "b3": u(ks[5], (1, output_dim), hidden_dim),
    }


def decoder_reference(z, params):
    h = jnp.maximum(z @ params["w1"] + params["b1"], 0.0)
    h = jnp.maximum(h @ params["w2"] + params["b2"], 0.0)
    return h @ params["w3"] + params["b3"]


if __name__ == "__main__":
    latent_dim, hidden_dim, output_dim = 16, 32, 24

    key = jax.random.PRNGKey(0)
    k_z, k_p = jax.random.split(key)
    params = init_decoder_params(k_p, latent_dim, hidden_dim, output_dim)

    # 1) Divisible batch (single step on 1-TC chips, 2 parallel steps on v7x).
    # 2) Non-divisible batch (exercises the clipped edge block path on v7x / capped tiles).
    for batch in (64, 70):
        z = jax.random.normal(jax.random.fold_in(k_z, batch),
                              (batch, latent_dim), dtype=jnp.float32)
        out = jax.block_until_ready(decoder_forward(z, params))
        ref = decoder_reference(z, params)
        assert out.shape == (batch, output_dim)
        assert jnp.allclose(out, ref, atol=1e-5, rtol=1e-5), f"mismatch at batch={batch}"

    # 3) Explicit small block to force a multi-step grid + clipped edge block on every chip.
    z = jax.random.normal(jax.random.fold_in(k_z, 7), (70, latent_dim), dtype=jnp.float32)
    out = jax.block_until_ready(decoder_forward(z, params, block_b=32))
    ref = decoder_reference(z, params)
    assert out.shape == (70, output_dim)
    assert jnp.allclose(out, ref, atol=1e-5, rtol=1e-5), "mismatch at block_b=32"

    print("KERNEL_OK")
</pallas_src>

<mosaic_0001>
module attributes {stable_mosaic.version = 11 : i64} {
  func.func @decoder_kernel(%arg0: i32, %arg1: memref<64x16xf32, #tpu.memory_space<vmem>>, %arg2: memref<16x32xf32, #tpu.memory_space<vmem>>, %arg3: memref<1x32xf32, #tpu.memory_space<vmem>>, %arg4: memref<32x32xf32, #tpu.memory_space<vmem>>, %arg5: memref<1x32xf32, #tpu.memory_space<vmem>>, %arg6: memref<32x24xf32, #tpu.memory_space<vmem>>, %arg7: memref<1x24xf32, #tpu.memory_space<vmem>>, %arg8: memref<64x24xf32, #tpu.memory_space<vmem>>) attributes {dimension_semantics = [#tpu.dimension_semantics<parallel>], iteration_bounds = array<i64: 1>, scalar_prefetch = 0 : i64, scratch_operands = 0 : i64, tpu.core_type = #tpu.core_type<tc>, window_params = [{transform_indices = @transform_0, window_bounds = array<i64: 64, 16>}, {pipeline_mode = #tpu.pipeline_mode<synchronous>, transform_indices = @transform_1, window_bounds = array<i64: 16, 32>}, {pipeline_mode = #tpu.pipeline_mode<synchronous>, transform_indices = @transform_2, window_bounds = array<i64: 1, 32>}, {pipeline_mode = #tpu.pipeline_mode<synchronous>, transform_indices = @transform_3, window_bounds = array<i64: 32, 32>}, {pipeline_mode = #tpu.pipeline_mode<synchronous>, transform_indices = @transform_4, window_bounds = array<i64: 1, 32>}, {pipeline_mode = #tpu.pipeline_mode<synchronous>, transform_indices = @transform_5, window_bounds = array<i64: 32, 24>}, {pipeline_mode = #tpu.pipeline_mode<synchronous>, transform_indices = @transform_6, window_bounds = array<i64: 1, 24>}, {transform_indices = @transform_7, window_bounds = array<i64: 64, 24>}]} {
    %c0 = arith.constant 0 : index
    %c0_0 = arith.constant 0 : index
    %0 = vector.load %arg1[%c0, %c0_0] : memref<64x16xf32, #tpu.memory_space<vmem>>, vector<64x16xf32>
    %c0_1 = arith.constant 0 : index
    %c0_2 = arith.constant 0 : index
    %1 = vector.load %arg2[%c0_1, %c0_2] : memref<16x32xf32, #tpu.memory_space<vmem>>, vector<16x32xf32>
    %cst = arith.constant dense<0.000000e+00> : vector<64x32xf32>
    %2 = tpu.matmul %0, %1, %cst {dimension_numbers = #tpu.dot_dimension_numbers<[1], [0], [0], [1], [0, 0, 1, 1], [], []>} : vector<64x16xf32>, vector<16x32xf32>, vector<64x32xf32> -> vector<64x32xf32>
    %c0_3 = arith.constant 0 : index
    %c0_4 = arith.constant 0 : index
    %3 = vector.load %arg3[%c0_3, %c0_4] : memref<1x32xf32, #tpu.memory_space<vmem>>, vector<1x32xf32>
    %4 = vector.broadcast %3 : vector<1x32xf32> to vector<64x32xf32>
    %5 = arith.addf %2, %4 : vector<64x32xf32>
    %cst_5 = arith.constant 0.000000e+00 : f32
    %6 = vector.broadcast %cst_5 : f32 to vector<64x32xf32>
    %7 = arith.maximumf %5, %6 : vector<64x32xf32>
    %c0_6 = arith.constant 0 : index
    %c0_7 = arith.constant 0 : index
    %8 = vector.load %arg4[%c0_6, %c0_7] : memref<32x32xf32, #tpu.memory_space<vmem>>, vector<32x32xf32>
    %cst_8 = arith.constant dense<0.000000e+00> : vector<64x32xf32>
    %9 = tpu.matmul %7, %8, %cst_8 {dimension_numbers = #tpu.dot_dimension_numbers<[1], [0], [0], [1], [0, 0, 1, 1], [], []>} : vector<64x32xf32>, vector<32x32xf32>, vector<64x32xf32> -> vector<64x32xf32>
    %c0_9 = arith.constant 0 : index
    %c0_10 = arith.constant 0 : index
    %10 = vector.load %arg5[%c0_9, %c0_10] : memref<1x32xf32, #tpu.memory_space<vmem>>, vector<1x32xf32>
    %11 = vector.broadcast %10 : vector<1x32xf32> to vector<64x32xf32>
    %12 = arith.addf %9, %11 : vector<64x32xf32>
    %cst_11 = arith.constant 0.000000e+00 : f32
    %13 = vector.broadcast %cst_11 : f32 to vector<64x32xf32>
    %14 = arith.maximumf %12, %13 : vector<64x32xf32>
    %c0_12 = arith.constant 0 : index
    %c0_13 = arith.constant 0 : index
    %15 = vector.load %arg6[%c0_12, %c0_13] : memref<32x24xf32, #tpu.memory_space<vmem>>, vector<32x24xf32>
    %cst_14 = arith.constant dense<0.000000e+00> : vector<64x24xf32>
    %16 = tpu.matmul %14, %15, %cst_14 {dimension_numbers = #tpu.dot_dimension_numbers<[1], [0], [0], [1], [0, 0, 1, 1], [], []>} : vector<64x32xf32>, vector<32x24xf32>, vector<64x24xf32> -> vector<64x24xf32>
    %c0_15 = arith.constant 0 : index
    %c0_16 = arith.constant 0 : index
    %17 = vector.load %arg7[%c0_15, %c0_16] : memref<1x24xf32, #tpu.memory_space<vmem>>, vector<1x24xf32>
    %18 = vector.broadcast %17 : vector<1x24xf32> to vector<64x24xf32>
    %19 = arith.addf %16, %18 : vector<64x24xf32>
    %c0_17 = arith.constant 0 : index
    %c0_18 = arith.constant 0 : index
    %20 = vector.load %arg8[%c0_17, %c0_18] : memref<64x24xf32, #tpu.memory_space<vmem>>, vector<64x24xf32>
    tpu.vector_store %arg8[%c0_17, %c0_18], %19 {strides = array<i32>} : memref<64x24xf32, #tpu.memory_space<vmem>>, vector<64x24xf32>,
    return
  }
  func.func @transform_0(%arg0: i32) -> (i32, i32) {
    %c0_i32 = arith.constant 0 : i32
    %c0_i32_0 = arith.constant 0 : i32
    return %arg0, %c0_i32 : i32, i32
  }
  func.func @transform_1(%arg0: i32) -> (i32, i32) {
    %c0_i32 = arith.constant 0 : i32
    %c0_i32_0 = arith.constant 0 : i32
    %c0_i32_1 = arith.constant 0 : i32
    return %c0_i32, %c0_i32_0 : i32, i32
  }
  func.func @transform_2(%arg0: i32) -> (i32, i32) {
    %c0_i32 = arith.constant 0 : i32
    %c0_i32_0 = arith.constant 0 : i32
    %c0_i32_1 = arith.constant 0 : i32
    return %c0_i32, %c0_i32_0 : i32, i32
  }
  func.func @transform_3(%arg0: i32) -> (i32, i32) {
    %c0_i32 = arith.constant 0 : i32
    %c0_i32_0 = arith.constant 0 : i32
    %c0_i32_1 = arith.constant 0 : i32
    return %c0_i32, %c0_i32_0 : i32, i32
  }
  func.func @transform_4(%arg0: i32) -> (i32, i32) {
    %c0_i32 = arith.constant 0 : i32
    %c0_i32_0 = arith.constant 0 : i32
    %c0_i32_1 = arith.constant 0 : i32
    return %c0_i32, %c0_i32_0 : i32, i32
  }
  func.func @transform_5(%arg0: i32) -> (i32, i32) {
    %c0_i32 = arith.constant 0 : i32
    %c0_i32_0 = arith.constant 0 : i32
    %c0_i32_1 = arith.constant 0 : i32
    return %c0_i32, %c0_i32_0 : i32, i32
  }
  func.func @transform_6(%arg0: i32) -> (i32, i32) {
    %c0_i32 = arith.constant 0 : i32
    %c0_i32_0 = arith.constant 0 : i32
    %c0_i32_1 = arith.constant 0 : i32
    return %c0_i32, %c0_i32_0 : i32, i32
  }
  func.func @transform_7(%arg0: i32) -> (i32, i32) {
    %c0_i32 = arith.constant 0 : i32
    %c0_i32_0 = arith.constant 0 : i32
    return %arg0, %c0_i32 : i32, i32
  }
}

</mosaic_0001>

<bundles_post_ra>
// kernel: decoder_forward.1
= control target key start
LH: loop header
LB: loop body
LE: loop exit
PB: predicated region body
PF: predicated region fallthrough
CT: control target
= control target key end

     0   :  { %12 = vsyncpa [#allocation3], 0  ;;  %s1131_s0 = inlined_call_operand.hbm [shape: f32[64,16], index: 0, kind: input, shape index: {}]   ;;  %s1132_s1 = inlined_call_operand.hbm [shape: f32[16,32], index: 1, kind: input, shape index: {}]   ;;  %s1133_s2 = inlined_call_operand.hbm [shape: f32[1,32], index: 2, kind: input, shape index: {}]   ;;  %s1134_s3 = inlined_call_operand.hbm [shape: f32[32,32], index: 3, kind: input, shape index: {}]   ;;  %s1135_s4 = inlined_call_operand.hbm [shape: f32[1,32], index: 4, kind: input, shape index: {}]   ;;  %s1136_s5 = inlined_call_operand.hbm [shape: f32[32,24], index: 5, kind: input, shape index: {}]   ;;  %s1137_s6 = inlined_call_operand.hbm [shape: f32[1,24], index: 6, kind: input, shape index: {}]   ;;  %s1138_s7 = inlined_call_operand.hbm [shape: f32[64,24], index: 7, kind: output, shape index: {}]  }
   0x1   :  { %13 = vsyncpa [#allocation6], 0 }
   0x2   :  { %14 = vsyncpa [#allocation9], 0 }
   0x3   :  { %15 = vsyncpa [#allocation12], 0 }
   0x4   :  { %16 = vsyncpa [#allocation4], 0  ;;  %s924_s24 = smov [#allocation5]   ;;  %s925_s26 = smov [#allocation8]  }
   0x5   :  { %s34_s25 = sshll.u32 %s924_s24, 4  ;;  %s56_s27 = sshll.u32 %s925_s26, 4  ;;  %s35_s25 = int_to_ptr.vmem [resolvable:$true] %s34_s25  ;;  %s974_s27 = int_to_ptr.vmem [resolvable:$true] %s56_s27 }
   0x6   :  { %s738_s30 = scalar_lea.hbm %s1132_s1, 256 }
   0x7   :  { %p739_p0 = scmp.ne.s32.totalorder %s1132_s1, %s738_s30  ;;  %p742_p1 = scmp.lt.u32.totalorder %s738_s30, %s1132_s1 }
   0x9   :  { %p744_p2 = pnand %p742_p1, %p739_p0 }
   0xb   :  { %747 = shalt.err (!%p744_p2)
}
   0xc   :  { %s748_s12 = scalar_lea.vmem %s35_s25, 256  ;;  %p753_p4 = scmp.lt.s32.totalorder %s35_s25, %s35_s25 }
   0xd   :  { %p749_p3 = scmp.ne.s32.totalorder %s35_s25, %s748_s12  ;;  %p754_p5 = scmp.lt.s32.totalorder %s748_s12, %s748_s12 }
   0xf   :  { %p755_p6 = por %p754_p5, %p753_p4 }
  0x11   :  { %p756_p7 = pnand %p755_p6, %p749_p3 }
  0x13   :  { %759 = shalt.err (!%p756_p7)
}
  0x14   :  { %s926_s13 = smov 128   ;;  %s927_s14 = smov 8  }
  0x15   :  { %40 = dma.hbm_to_vmem [thread:$0]  %s1132_s1, 256, %s35_s25, [#allocation6], %s926_s13, %s926_s13, %s927_s14  }
  0x16   :  { %s760_s19 = scalar_lea.hbm %s1134_s3, 512 }
  0x17   :  { %p761_p8 = scmp.ne.s32.totalorder %s1134_s3, %s760_s19  ;;  %p764_p9 = scmp.lt.u32.totalorder %s760_s19, %s1134_s3 }
  0x19   :  { %p766_p10 = pnand %p764_p9, %p761_p8 }
  0x1b   :  { %769 = shalt.err (!%p766_p10)
}
  0x1c   :  { %s770_s24 = scalar_lea.vmem %s974_s27, 512  ;;  %p775_p12 = scmp.lt.s32.totalorder %s974_s27, %s974_s27 }
  0x1d   :  { %p771_p11 = scmp.ne.s32.totalorder %s974_s27, %s770_s24  ;;  %p776_p13 = scmp.lt.s32.totalorder %s770_s24, %s770_s24 }
  0x1f   :  { %p777_p0 = por %p776_p13, %p775_p12 }
  0x21   :  { %p778_p1 = pnand %p777_p0, %p771_p11 }
  0x23   :  { %781 = shalt.err (!%p778_p1)
}
  0x24   :  { %62 = dma.hbm_to_vmem [thread:$0]  %s1134_s3, 512, %s974_s27, [#allocation9], %s926_s13, %s926_s13, %s927_s14  }
  0x25   :  { %s928_s26 = smov [#allocation11]   ;;  %s929_s29 = smov [#allocation2]  }
  0x26   :  { %s78_s28 = sshll.u32 %s928_s26, 4  ;;  %s22_s30 = sshll.u32 %s929_s29, 4  ;;  %s79_s28 = int_to_ptr.vmem [resolvable:$true] %s78_s28  ;;  %s1011_s30 = int_to_ptr.vmem [resolvable:$true] %s22_s30 }
  0x27   :  { %s782_s10 = scalar_lea.hbm %s1136_s5, 512 }
  0x28   :  { %p783_p2 = scmp.ne.s32.totalorder %s1136_s5, %s782_s10  ;;  %p786_p3 = scmp.lt.u32.totalorder %s782_s10, %s1136_s5 }
  0x2a   :  { %p788_p4 = pnand %p786_p3, %p783_p2 }
  0x2c   :  { %791 = shalt.err (!%p788_p4)
}
  0x2d   :  { %s792_s3 = scalar_lea.vmem %s79_s28, 512  ;;  %p797_p6 = scmp.lt.s32.totalorder %s79_s28, %s79_s28 }
  0x2e   :  { %p793_p5 = scmp.ne.s32.totalorder %s79_s28, %s792_s3  ;;  %p798_p7 = scmp.lt.s32.totalorder %s792_s3, %s792_s3 }
  0x30   :  { %p799_p8 = por %p798_p7, %p797_p6 }
  0x32   :  { %p800_p9 = pnand %p799_p8, %p793_p5 }
  0x34   :  { %803 = shalt.err (!%p800_p9)
}
  0x35   :  { %84 = dma.hbm_to_vmem [thread:$0]  %s1136_s5, 512, %s79_s28, [#allocation12], %s926_s13, %s926_s13, %s927_s14  }
  0x36   :  { %s804_s20 = scalar_lea.hbm %s1131_s0, 1024 }
  0x37   :  { %p805_p10 = scmp.ne.s32.totalorder %s1131_s0, %s804_s20  ;;  %p808_p11 = scmp.lt.u32.totalorder %s804_s20, %s1131_s0 }
  0x39   :  { %p810_p12 = pnand %p808_p11, %p805_p10 }
  0x3b   :  { %813 = shalt.err (!%p810_p12)
}
  0x3c   :  { %s814_s1 = scalar_lea.vmem %s1011_s30, 1024  ;;  %p819_p0 = scmp.lt.s32.totalorder %s1011_s30, %s1011_s30 }
  0x3d   :  { %p815_p13 = scmp.ne.s32.totalorder %s1011_s30, %s814_s1  ;;  %p820_p1 = scmp.lt.s32.totalorder %s814_s1, %s814_s1 }
  0x3f   :  { %p821_p2 = por %p820_p1, %p819_p0 }
  0x41   :  { %p822_p3 = pnand %p821_p2, %p815_p13 }
  0x43   :  { %825 = shalt.err (!%p822_p3)
}
  0x44   :  { %28 = dma.hbm_to_vmem [thread:$0]  %s1131_s0, 1024, %s1011_s30, [#allocation3], %s926_s13, %s926_s13, %s927_s14  }
  0x45   :  { %s930_s26 = smov [#allocation7]   ;;  %s931_s29 = smov [#allocation10]  }
  0x46   :  { %s47_s28 = sshll.u32 %s930_s26, 4  ;;  %s69_s8 = sshll.u32 %s931_s29, 4  ;;  %s48_s28 = int_to_ptr.vmem [resolvable:$true] %s47_s28  ;;  %s70_s8 = int_to_ptr.vmem [resolvable:$true] %s69_s8 }
  0x47   :  { %s826_s11 = scalar_lea.hbm %s1133_s2, 16 }
  0x48   :  { %p827_p4 = scmp.ne.s32.totalorder %s1133_s2, %s826_s11  ;;  %p830_p5 = scmp.lt.u32.totalorder %s826_s11, %s1133_s2 }
  0x4a   :  { %p832_p6 = pnand %p830_p5, %p827_p4 }
  0x4c   :  { %835 = shalt.err (!%p832_p6)
}
  0x4d   :  { %s836_s0 = scalar_lea.vmem %s48_s28, 16  ;;  %s840_s30 = scalar_lea.vmem %s48_s28, 32 }
  0x4e   :  { %p837_p7 = scmp.ne.s32.totalorder %s48_s28, %s836_s0  ;;  %p841_p8 = scmp.lt.s32.totalorder %s48_s28, %s48_s28 }
  0x4f   :  { %p842_p9 = scmp.lt.s32.totalorder %s840_s30, %s836_s0 }
  0x51   :  { %p843_p10 = por %p842_p9, %p841_p8 }
  0x53   :  { %p844_p11 = pnand %p843_p10, %p837_p7 }
  0x55   :  { %847 = shalt.err (!%p844_p11)
}
  0x56   :  { %50 = dma.hbm_to_vmem [thread:$0]  %s1133_s2, 16, %s48_s28, [#allocation6]  }
  0x57   :  { %s848_s20 = scalar_lea.hbm %s1135_s4, 16 }
  0x58   :  { %p849_p12 = scmp.ne.s32.totalorder %s1135_s4, %s848_s20  ;;  %p852_p13 = scmp.lt.u32.totalorder %s848_s20, %s1135_s4 }
  0x5a   :  { %p854_p0 = pnand %p852_p13, %p849_p12 }
  0x5c   :  { %857 = shalt.err (!%p854_p0)
}
  0x5d   :  { %s858_s1 = scalar_lea.vmem %s70_s8, 16  ;;  %s862_s5 = scalar_lea.vmem %s70_s8, 32 }
  0x5e   :  { %p859_p1 = scmp.ne.s32.totalorder %s70_s8, %s858_s1  ;;  %p863_p2 = scmp.lt.s32.totalorder %s70_s8, %s70_s8 }
  0x5f   :  { %p864_p3 = scmp.lt.s32.totalorder %s862_s5, %s858_s1 }
  0x61   :  { %p865_p4 = por %p864_p3, %p863_p2 }
  0x63   :  { %p866_p5 = pnand %p865_p4, %p859_p1 }
  0x65   :  { %869 = shalt.err (!%p866_p5)
}
  0x66   :  { %72 = dma.hbm_to_vmem [thread:$0]  %s1135_s4, 16, %s70_s8, [#allocation9]  }
  0x67   :  { %s932_s26 = smov [#allocation13]   ;;  %s870_s10 = scalar_lea.hbm %s1137_s6, 16 }
  0x68   :  { %s91_s28 = sshll.u32 %s932_s26, 4  ;;  %p871_p6 = scmp.ne.s32.totalorder %s1137_s6, %s870_s10  ;;  %s92_s28 = int_to_ptr.vmem [resolvable:$true] %s91_s28 }
  0x69   :  { %p874_p7 = scmp.lt.u32.totalorder %s870_s10, %s1137_s6 }
  0x6b   :  { %p876_p8 = pnand %p874_p7, %p871_p6 }
  0x6d   :  { %879 = shalt.err (!%p876_p8)
}
  0x6e   :  { %s880_s3 = scalar_lea.vmem %s92_s28, 16  ;;  %s884_s4 = scalar_lea.vmem %s92_s28, 32 }
  0x6f   :  { %p881_p9 = scmp.ne.s32.totalorder %s92_s28, %s880_s3  ;;  %p885_p10 = scmp.lt.s32.totalorder %s92_s28, %s92_s28 }
  0x70   :  { %p886_p11 = scmp.lt.s32.totalorder %s884_s4, %s880_s3 }
  0x72   :  { %p887_p12 = por %p886_p11, %p885_p10 }
  0x74   :  { %p888_p13 = pnand %p887_p12, %p881_p9 }
  0x76   :  { %891 = shalt.err (!%p888_p13)
}
  0x77   :  { %94 = dma.hbm_to_vmem [thread:$0]  %s1137_s6, 16, %s92_s28, [#allocation12]  }
  0x78   :  { %914 = dma.done.wait [#allocation3], 1024  }
  0x79   :  { %915 = vsyncadd [#allocation3], 4294966272 }
  0x7a   :  { %916 = dma.done.wait [#allocation6], 272  }
  0x7b   :  { %917 = vsyncadd [#allocation6], 4294967024 }
  0x7c   :  { %918 = dma.done.wait [#allocation9], 528  }
  0x7d   :  { %919 = vsyncadd [#allocation9], 4294966768 }
  0x7e   :  { %920 = dma.done.wait [#allocation12], 528  }
  0x7f   :  { %921 = vsyncadd [#allocation12], 4294966768  ;;  %vm133_vm0 = vcmask 130048   ;;  %v124_v0 = vld [vmem:[#allocation5] sm:$0xff]  ;;  %v125_v1 = vld [vmem:[#allocation5 + $0x8] sm:$0xff]  ;;  %vm282_vm1 = vcmask 261120  }
  0x80   :  { %v116_v2 = vld [vmem:[#allocation2] sm:$0xff]  ;;  %v706_v3 = vpack.c.bf16 %v125_v1, %v124_v0  ;;  %v271_v5 = vld [vmem:[#allocation8] sm:$0xff]  ;;  %v117_v7 = vld [vmem:[#allocation2 + $0x8] sm:$0xff]  ;;  %vm560_vm2 = vcmask 195584   ;;  %s933_s6 = smov [#allocation14]  }
  0x81   :  { %654 = vmatprep.mubr.msk.f32.mxu0 %vm133_vm0, %v116_v2  ;;  %v120_v4 = vld [vmem:[#allocation2 + $0x20] sm:$0xff]  ;;  %v121_v8 = vld [vmem:[#allocation2 + $0x28] sm:$0xff]  ;;  %v118_v10 = vld [vmem:[#allocation2 + $0x10] sm:$0xff]  ;;  %s574_s30 = sshll.u32 %s933_s6, 4  ;;  %s575_s30 = int_to_ptr.vmem [resolvable:$true] %s574_s30 }
  0x82   :  { %707 = vmatprep.subr.bf16.mxu0 %v706_v3  ;;  %726 = vmatprep.subr.bf16.mxu1 %v706_v3  ;;  %v272_v6 = vld [vmem:[#allocation8 + $0x8] sm:$0xff]  ;;  %v122_v11 = vld [vmem:[#allocation2 + $0x30] sm:$0xff]  ;;  %v273_v14 = vld [vmem:[#allocation8 + $0x10] sm:$0xff]  ;;  %s892_s27 = scalar_lea.vmem %s575_s30, 1024  ;;  %p897_p1 = scmp.lt.s32.totalorder %s575_s30, %s575_s30 }
  0x83   :  { %709 = vmatpush3.bf16.msra.mxu0 %v706_v3  ;;  %727 = vmatpush3.bf16.msra.mxu1 %v706_v3  ;;  %v710_v9 = vpack.c.bf16 %v272_v6, %v271_v5  ;;  %v119_v12 = vld [vmem:[#allocation2 + $0x18] sm:$0xff]  ;;  %v274_v15 = vld [vmem:[#allocation8 + $0x18] sm:$0xff]  ;;  %v598_v48 = vld [vmem:[#allocation10] ss:$0 sm:$0xff]  ;;  %p893_p0 = scmp.ne.s32.totalorder %s575_s30, %s892_s27  ;;  %p898_p2 = scmp.lt.s32.totalorder %s892_s27, %s892_s27 }
  0x84   :  { %660 = vmatprep.mubr.msk.f32.mxu1 %vm133_vm0, %v120_v4  ;;  %v123_v13 = vld [vmem:[#allocation2 + $0x38] sm:$0xff]  ;;  %v714_v16 = vpack.c.bf16 %v274_v15, %v273_v14  ;;  %v589_v20 = vld [vmem:[#allocation7] ss:$0 sm:$0xff]  ;;  %v422_v45 = vld [vmem:[#allocation11 + $0x10] sm:$0xff] }
  0x85   :  { %711 = vmatprep.subr.bf16.mxu1 %v710_v9  ;;  %v420_v17 = vld [vmem:[#allocation11] sm:$0xff]  ;;  %v421_v18 = vld [vmem:[#allocation11 + $0x8] sm:$0xff]  ;;  %v423_v46 = vld [vmem:[#allocation11 + $0x18] sm:$0xff]  ;;  %p899_p3 = por %p898_p2, %p897_p1 }
  0x86   :  { %655 = vmatmul.mubr.msk.f32.vlgmr.msra.gmra.mrb[0].mxu0 %vm133_vm0, %v117_v7  ;;  %661 = vmatmul.mubr.msk.f32.vlgmr.msra.gmra.mrb[0].mxu1 %vm133_vm0, %v121_v8  ;;  %v718_v19 = vpack.c.bf16 %v421_v18, %v420_v17  ;;  %v722_v47 = vpack.c.bf16 %v423_v46, %v422_v45 }
  0x87   :  { %657 = vmatprep.mubr.msk.f32.mxu0 %vm133_vm0, %v118_v10  ;;  %663 = vmatprep.mubr.msk.f32.mxu1 %vm133_vm0, %v122_v11  ;;  %p900_p4 = pnand %p899_p3, %p893_p0 }
  0x88   :  { %713 = vmatpush3.bf16.msra.mxu1 %v710_v9  ;;  %719 = vmatprep.subr.bf16.mxu0 %v718_v19  ;;  %v607_v9 = vld [vmem:[#allocation13] ss:$0 sm:$0xff] }
  0x89   :  { %715 = vmatprep.subr.bf16.mxu1 %v714_v16  ;;  %721 = vmatpush3.bf16.msra.mxu0 %v718_v19 }
  0x8a   :  { %658 = vmatmul.mubr.msk.f32.gmra.mrb[2].mxu0 %vm133_vm0, %v119_v12  ;;  %664 = vmatmul.mubr.msk.f32.gmra.mrb[2].mxu1 %vm133_vm0, %v123_v13 }
  0x8b   :  { %723 = vmatprep.subr.bf16.mxu0 %v722_v47 }
  0x8c   :  { %717 = vmatpush3.bf16.msra.mxu1 %v714_v16 }
  0x8d   :  { %725 = vmatpush3.bf16.msra.mxu0 %v722_v47 }
 0x159   :  { %v656_v21 = vpop.f32.mrb[0].mxu0  ;;  %v662_v22 = vpop.f32.mrb[0].mxu1 }
 0x15a   :  { %v230_v23 = vadd.f32 %v656_v21, %v589_v20  ;;  %v224_v24 = vpop.f32.mrb[1].mxu0  ;;  %v244_v25 = vpop.f32.mrb[1].mxu1  ;;  %v250_v40 = vadd.f32 %v662_v22, %v589_v20 }
 0x15b   :  { %v225_v26 = vadd.f32 %v589_v20, %v224_v24  ;;  %v245_v29 = vadd.f32 %v589_v20, %v244_v25 }
 0x15c   :  { %v264_v31 = vmax.f32 %v230_v23, 0.0  ;;  %v268_v42 = vmax.f32 %v250_v40, 0.0 }
 0x15d   :  { %v263_v27 = vmax.f32 %v225_v26, 0.0  ;;  %v659_v28 = vpop.f32.mrb[2].mxu0  ;;  %v665_v30 = vpop.f32.mrb[2].mxu1  ;;  %v267_v37 = vmax.f32 %v245_v29, 0.0 }
 0x15e   :  { %v240_v32 = vadd.f32 %v659_v28, %v589_v20  ;;  %v234_v33 = vpop.f32.mrb[3].mxu0  ;;  %v254_v34 = vpop.f32.mrb[3].mxu1  ;;  %v260_v43 = vadd.f32 %v665_v30, %v589_v20 }
 0x15f   :  { %v235_v35 = vadd.f32 %v589_v20, %v234_v33  ;;  %674 = vmatprep.mubr.msk.f32.mxu1 %vm282_vm1, %v263_v27  ;;  %v255_v38 = vadd.f32 %v589_v20, %v254_v34 }
 0x160   :  { %675 = vmatmul.mubr.msk.f32.vlgmr.msra.gmra.mrb[4].mxu1 %vm282_vm1, %v264_v31  ;;  %v266_v39 = vmax.f32 %v240_v32, 0.0  ;;  %v270_v44 = vmax.f32 %v260_v43, 0.0 }
 0x161   :  { %v265_v36 = vmax.f32 %v235_v35, 0.0  ;;  %v269_v41 = vmax.f32 %v255_v38, 0.0 }
 0x163   :  { %677 = vmatprep.mubr.msk.f32.mxu1 %vm282_vm1, %v265_v36 }
 0x164   :  { %678 = vmatmul.mubr.msk.f32.gmra.mrb[6].mxu1 %vm282_vm1, %v266_v39 }
 0x165   :  { %680 = vmatprep.mubr.msk.f32.mxu1 %vm282_vm1, %v267_v37 }
 0x168   :  { %681 = vmatmul.mubr.msk.f32.gmra.mrb[8].mxu1 %vm282_vm1, %v268_v42 }
 0x169   :  { %683 = vmatprep.mubr.msk.f32.mxu1 %vm282_vm1, %v269_v41 }
 0x16c   :  { %684 = vmatmul.mubr.msk.f32.gmra.mrb[10].mxu1 %vm282_vm1, %v270_v44 }
 0x233   :  { %v676_v49 = vpop.f32.mrb[4].mxu1 }
 0x234   :  { %v379_v50 = vadd.f32 %v676_v49, %v598_v48  ;;  %v373_v51 = vpop.f32.mrb[5].mxu1 }
 0x235   :  { %v374_v52 = vadd.f32 %v598_v48, %v373_v51 }
 0x236   :  { %v413_v55 = vmax.f32 %v379_v50, 0.0 }
 0x237   :  { %v412_v53 = vmax.f32 %v374_v52, 0.0  ;;  %v679_v54 = vpop.f32.mrb[6].mxu1 }
 0x238   :  { %v389_v56 = vadd.f32 %v679_v54, %v598_v48  ;;  %v383_v57 = vpop.f32.mrb[7].mxu1 }
 0x239   :  { %v384_v58 = vadd.f32 %v598_v48, %v383_v57  ;;  %694 = vmatprep.mubr.msk.f32.mxu0 %vm282_vm1, %v412_v53 }
 0x23a   :  { %695 = vmatmul.mubr.msk.f32.vlgmr.msra.gmra.mrb[4].mxu0 %vm282_vm1, %v413_v55  ;;  %v415_v61 = vmax.f32 %v389_v56, 0.0 }
 0x23b   :  { %v414_v59 = vmax.f32 %v384_v58, 0.0  ;;  %v682_v60 = vpop.f32.mrb[8].mxu1 }
 0x23c   :  { %v399_v62 = vadd.f32 %v682_v60, %v598_v48  ;;  %v393_v63 = vpop.f32.mrb[9].mxu1 }
 0x23d   :  { %v394_v0 = vadd.f32 %v598_v48, %v393_v63  ;;  %697 = vmatprep.mubr.msk.f32.mxu0 %vm282_vm1, %v414_v59 }
 0x23e   :  { %698 = vmatmul.mubr.msk.f32.gmra.mrb[6].mxu0 %vm282_vm1, %v415_v61  ;;  %v417_v3 = vmax.f32 %v399_v62, 0.0 }
 0x23f   :  { %v416_v1 = vmax.f32 %v394_v0, 0.0  ;;  %v685_v2 = vpop.f32.mrb[10].mxu1 }
 0x240   :  { %v409_v4 = vadd.f32 %v685_v2, %v598_v48  ;;  %v403_v5 = vpop.f32.mrb[11].mxu1 }
 0x241   :  { %v404_v6 = vadd.f32 %v598_v48, %v403_v5  ;;  %700 = vmatprep.mubr.msk.f32.mxu0 %vm282_vm1, %v416_v1 }
 0x242   :  { %701 = vmatmul.mubr.msk.f32.gmra.mrb[8].mxu0 %vm282_vm1, %v417_v3  ;;  %v419_v8 = vmax.f32 %v409_v4, 0.0 }
 0x243   :  { %v418_v7 = vmax.f32 %v404_v6, 0.0 }
 0x245   :  { %703 = vmatprep.mubr.msk.f32.mxu0 %vm282_vm1, %v418_v7 }
 0x246   :  { %704 = vmatmul.mubr.msk.f32.gmra.mrb[10].mxu0 %vm282_vm1, %v419_v8 }
 0x30d   :  { %v696_v10 = vpop.f32.mrb[4].mxu0 }
 0x30e   :  { %v527_v11 = vadd.f32 %v696_v10, %v607_v9  ;;  %v521_v12 = vpop.f32.mrb[5].mxu0 }
 0x30f   :  { %v522_v13 = vadd.f32 %v607_v9, %v521_v12 }
 0x310   :  { %562 = vst.msk [vmem:[#allocation14 + $0x8] sm:$0xff] %vm560_vm2, %v527_v11 }
 0x311   :  { %561 = vst.msk [vmem:[#allocation14] sm:$0xff] %vm560_vm2, %v522_v13  ;;  %v699_v14 = vpop.f32.mrb[6].mxu0 }
 0x312   :  { %v537_v15 = vadd.f32 %v699_v14, %v607_v9  ;;  %v531_v16 = vpop.f32.mrb[7].mxu0 }
 0x313   :  { %v532_v17 = vadd.f32 %v607_v9, %v531_v16 }
 0x314   :  { %564 = vst.msk [vmem:[#allocation14 + $0x18] sm:$0xff] %vm560_vm2, %v537_v15 }
 0x315   :  { %563 = vst.msk [vmem:[#allocation14 + $0x10] sm:$0xff] %vm560_vm2, %v532_v17  ;;  %v702_v18 = vpop.f32.mrb[8].mxu0 }
 0x316   :  { %v547_v19 = vadd.f32 %v702_v18, %v607_v9  ;;  %v541_v20 = vpop.f32.mrb[9].mxu0 }
 0x317   :  { %v542_v21 = vadd.f32 %v607_v9, %v541_v20 }
 0x318   :  { %566 = vst.msk [vmem:[#allocation14 + $0x28] sm:$0xff] %vm560_vm2, %v547_v19 }
 0x319   :  { %565 = vst.msk [vmem:[#allocation14 + $0x20] sm:$0xff] %vm560_vm2, %v542_v21  ;;  %v705_v22 = vpop.f32.mrb[10].mxu0 }
 0x31a   :  { %v557_v23 = vadd.f32 %v705_v22, %v607_v9  ;;  %v551_v24 = vpop.f32.mrb[11].mxu0 }
 0x31b   :  { %v552_v25 = vadd.f32 %v607_v9, %v551_v24 }
 0x31c   :  { %568 = vst.msk [vmem:[#allocation14 + $0x38] sm:$0xff] %vm560_vm2, %v557_v23 }
 0x31d   :  { %567 = vst.msk [vmem:[#allocation14 + $0x30] sm:$0xff] %vm560_vm2, %v552_v25 }
 0x31e   :  { %903 = shalt.err (!%p900_p4)
}
 0x31f   :  { %s904_s19 = scalar_lea.hbm %s1138_s7, 1024 }
 0x320   :  { %p905_p5 = scmp.ne.s32.totalorder %s1138_s7, %s904_s19  ;;  %p908_p6 = scmp.lt.u32.totalorder %s904_s19, %s1138_s7 }
 0x322   :  { %p910_p7 = pnand %p908_p6, %p905_p5 }
 0x324   :  { %913 = shalt.err (!%p910_p7)
}
 0x325   :  { %580 = dma.vmem_to_hbm [thread:$0]  %s575_s30, 1024, %s1138_s7, [#allocation4], %s926_s13, %s926_s13, %s927_s14  }
 0x326   :  { %922 = dma.done.wait [#allocation4], 1024  }
 0x327   :  { %923 = vsyncadd [#allocation4], 4294966272 }
 0x328   :  { %584 = vsyncpa [#allocation3], 1 }
 0x329   :  { %585 = vsyncpa [#allocation6], 1 }
 0x32a   :  { %586 = vsyncpa [#allocation9], 1 }
 0x32b   :  { %587 = vsyncpa [#allocation12], 1 }
 0x32c   :  { %588 = vsyncpa [#allocation4], 1 }

</bundles_post_ra>
